<compile_context>
chip_gen: v6e
topology: v6e:2x2x1
jax: 0.10.0
libtpu: 0.0.40
codegen_flags: <defaults>
</compile_context>

<pallas_src>
import functools

import jax
import jax.numpy as jnp
from jax.experimental import pallas as pl
from jax.experimental.pallas import tpu as pltpu


def lstm_classifier_kernel(ids_ref, emb_ref, wih_ref, whh_ref, b_ref,
                           wlab_ref, blab_ref, out_ref,
                           embeds_ref, xw_ref, *, hidden_dim):
    seq_len = embeds_ref.shape[0]
    H = hidden_dim                        # true hidden size (32)
    Gp = whh_ref.shape[1]                 # packed gate width, lane-aligned (== 128 here)

    # --- Fused embedding gather: SMEM ids -> per-row dynamic VMEM reads into scratch ---
    for t in range(seq_len):
        embeds_ref[t:t + 1, :] = emb_ref[pl.ds(ids_ref[t], 1), :]

    # --- Hoisted input projection + fused bias (one MXU call), parked in VMEM scratch ---
    xw_ref[...] = (
        jnp.dot(embeds_ref[...].astype(jnp.bfloat16), wih_ref[...],
                preferred_element_type=jnp.float32)
        + b_ref[...])                                                     # (seq_len, Gp) f32

    whh = whh_ref[...]                    # (H, Gp) bf16, loop-invariant, held in vregs

    # Gate column order is (i, f, o, g), each H lanes wide: sigmoid on the first 3*H lanes,
    # tanh on the rest (padded gate lanes, if any, are never read by the slices below).
    lane = jax.lax.broadcasted_iota(jnp.int32, (1, Gp), 1)
    sig_mask = lane < 3 * H

    # init_hidden(): zero h / c, carried as register values (no per-step VMEM round-trips).
    h = jnp.zeros((1, H), jnp.float32)
    c = jnp.zeros((1, H), jnp.float32)

    # Fully-unrolled recurrence; only h @ whh sits on the serial per-step chain.
    for t in range(seq_len):
        gates = xw_ref[t:t + 1, :] + jnp.dot(
            h.astype(jnp.bfloat16), whh, preferred_element_type=jnp.float32)   # (1, Gp)
        act = jnp.where(sig_mask, jax.nn.sigmoid(gates), jnp.tanh(gates))       # (1, Gp)
        i_g = act[:, 0 * H:1 * H]
        f_g = act[:, 1 * H:2 * H]
        o_g = act[:, 2 * H:3 * H]
        g_g = act[:, 3 * H:4 * H]
        c = f_g * c + i_g * g_g
        h = o_g * jnp.tanh(c)

    # hidden2label on lstm_out[-1] (== final h), then softmax over dim=1.
    logits = jnp.dot(h, wlab_ref[...],
                     preferred_element_type=jnp.float32) + blab_ref[...]        # (1, L)
    m = jnp.max(logits, axis=1, keepdims=True)
    e = jnp.exp(logits - m)
    out_ref[...] = e / jnp.sum(e, axis=1, keepdims=True)


def lstm_classifier_forward(sentence, params):
    """sentence: int32 (seq_len,) token ids.  Returns softmax probs (1, label_size)."""
    emb_table = params["embedding"]          # (vocab, E)  f32
    wih_t = params["w_ih_t"]                 # (E, Gp)     bf16, gate order (i,f,o,g)
    whh_t = params["w_hh_t"]                 # (H, Gp)     bf16
    bias = params["bias"]                    # (1, Gp)     f32  = b_ih + b_hh (reordered)
    wlab_t = params["w_label_t"]             # (H, L)      f32
    blab = params["b_label"]                 # (1, L)      f32

    seq_len = sentence.shape[0]
    vocab, E = emb_table.shape
    H, Gp = whh_t.shape
    L = wlab_t.shape[1]

    def spec2d(shape):
        return pl.BlockSpec(shape, lambda i, ids: (0, 0))

    grid_spec = pltpu.PrefetchScalarGridSpec(
        num_scalar_prefetch=1,               # `sentence` -> SMEM, first kernel ref
        grid=(1,),
        in_specs=[
            spec2d((vocab, E)),
            spec2d((E, Gp)),
            spec2d((H, Gp)),
            spec2d((1, Gp)),
            spec2d((H, L)),
            spec2d((1, L)),
        ],
        out_specs=spec2d((1, L)),
        scratch_shapes=[
            pltpu.VMEM((seq_len, E), jnp.float32),    # gathered embeddings
            pltpu.VMEM((seq_len, Gp), jnp.float32),   # hoisted xw projection
        ],
    )

    kernel = functools.partial(lstm_classifier_kernel, hidden_dim=H)

    return pl.pallas_call(
        kernel,
        out_shape=jax.ShapeDtypeStruct((1, L), jnp.float32),
        grid_spec=grid_spec,
        compiler_params=pltpu.CompilerParams(
            dimension_semantics=("arbitrary",)),
    )(sentence, emb_table, wih_t, whh_t, bias, wlab_t, blab)


def init_raw_params(key, vocab_size, embedding_dim, hidden_dim, label_size):
    """PyTorch-layout parameters (weight_ih/hh rows ordered [i; f; g; o])."""
    ks = jax.random.split(key, 7)
    scale = 0.1
    return {
        "embedding": jax.random.normal(ks[0], (vocab_size, embedding_dim), jnp.float32) * scale,
        "w_ih": jax.random.normal(ks[1], (4 * hidden_dim, embedding_dim), jnp.float32) * scale,
        "w_hh": jax.random.normal(ks[2], (4 * hidden_dim, hidden_dim), jnp.float32) * scale,
        "b_ih": jax.random.normal(ks[3], (4 * hidden_dim,), jnp.float32) * scale,
        "b_hh": jax.random.normal(ks[4], (4 * hidden_dim,), jnp.float32) * scale,
        "w_label": jax.random.normal(ks[5], (label_size, hidden_dim), jnp.float32) * scale,
        "b_label": jax.random.normal(ks[6], (label_size,), jnp.float32) * scale,
    }


def pack_params(raw):
    """Repack PyTorch-layout weights into the kernel layout:
    gates packed contiguously in order (i, f, o, g) into a Gp = ceil(4H/128)*128 lane block,
    MXU weight operands cast to bf16, biases/output head kept in f32."""
    H = raw["w_hh"].shape[1]
    Gp = max(128, -(-(4 * H) // 128) * 128)
    pad = Gp - 4 * H
    order = ("i", "f", "o", "g")

    def reorder_cols(w):                  # w: (4H, X) -> (X, 4H) with gate order (i,f,o,g)
        i, f, g, o = jnp.split(w, 4, axis=0)
        blocks = {"i": i, "f": f, "g": g, "o": o}
        return jnp.concatenate([blocks[k].T for k in order], axis=1)

    w_ih_t = jnp.pad(reorder_cols(raw["w_ih"]), ((0, 0), (0, pad)))       # (E, Gp)
    w_hh_t = jnp.pad(reorder_cols(raw["w_hh"]), ((0, 0), (0, pad)))       # (H, Gp)

    b = raw["b_ih"] + raw["b_hh"]
    bi, bf, bg, bo = jnp.split(b, 4)
    bd = {"i": bi, "f": bf, "g": bg, "o": bo}
    bias = jnp.pad(jnp.concatenate([bd[k] for k in order]), (0, pad))[None, :]  # (1, Gp)

    return {
        "embedding": raw["embedding"].astype(jnp.float32),
        "w_ih_t": w_ih_t.astype(jnp.bfloat16),
        "w_hh_t": w_hh_t.astype(jnp.bfloat16),
        "bias": bias.astype(jnp.float32),
        "w_label_t": raw["w_label"].T.astype(jnp.float32),                # (H, L)
        "b_label": raw["b_label"][None, :].astype(jnp.float32),           # (1, L)
    }


def lstm_classifier_reference(sentence, raw):
    """Pure-JAX all-f32 reference with the original PyTorch layout (for correctness check)."""
    emb = raw["embedding"][sentence]
    H = raw["w_hh"].shape[1]
    h = jnp.zeros((1, H), jnp.float32)
    c = jnp.zeros((1, H), jnp.float32)
    w_ih_t, w_hh_t = raw["w_ih"].T, raw["w_hh"].T
    b = (raw["b_ih"] + raw["b_hh"])[None, :]
    for t in range(emb.shape[0]):
        gates = emb[t:t + 1] @ w_ih_t + h @ w_hh_t + b
        i = jax.nn.sigmoid(gates[:, 0 * H:1 * H])
        f = jax.nn.sigmoid(gates[:, 1 * H:2 * H])
        g = jnp.tanh(gates[:, 2 * H:3 * H])
        o = jax.nn.sigmoid(gates[:, 3 * H:4 * H])
        c = f * c + i * g
        h = o * jnp.tanh(c)
    logits = h @ raw["w_label"].T + raw["b_label"][None, :]
    return jax.nn.softmax(logits, axis=1)


if __name__ == "__main__":
    embedding_dim = 16
    hidden_dim = 32
    vocab_size = 100
    label_size = 4
    seq_len = 8

    key = jax.random.PRNGKey(0)
    pkey, skey = jax.random.split(key)
    raw = init_raw_params(pkey, vocab_size, embedding_dim, hidden_dim, label_size)
    params = pack_params(raw)
    sentence = jax.random.randint(skey, (seq_len,), 0, vocab_size, dtype=jnp.int32)

    forward = jax.jit(lstm_classifier_forward)
    probs = jax.block_until_ready(forward(sentence, params))

    ref = lstm_classifier_reference(sentence, raw)

    assert probs.shape == (1, label_size)
    assert bool(jnp.isfinite(probs).all())
    assert abs(float(jnp.sum(probs)) - 1.0) < 1e-4
    # Kernel uses bf16 MXU operands (f32 accumulation); reference is all-f32.
    assert float(jnp.max(jnp.abs(probs - ref))) < 5e-3
    print("KERNEL_OK")
</pallas_src>

<mosaic_0001>
module attributes {stable_mosaic.version = 11 : i64} {
  func.func @lstm_classifier_kernel(%arg0: i32, %arg1: memref<8xi32, #tpu.memory_space<smem>>, %arg2: memref<100x16xf32, #tpu.memory_space<vmem>>, %arg3: memref<16x128xbf16, #tpu.memory_space<vmem>>, %arg4: memref<32x128xbf16, #tpu.memory_space<vmem>>, %arg5: memref<1x128xf32, #tpu.memory_space<vmem>>, %arg6: memref<32x4xf32, #tpu.memory_space<vmem>>, %arg7: memref<1x4xf32, #tpu.memory_space<vmem>>, %arg8: memref<1x4xf32, #tpu.memory_space<vmem>>, %arg9: memref<8x16xf32, #tpu.memory_space<vmem>>, %arg10: memref<8x128xf32, #tpu.memory_space<vmem>>) attributes {dimension_semantics = [#tpu.dimension_semantics<arbitrary>], iteration_bounds = array<i64: 1>, scalar_prefetch = 1 : i64, scratch_operands = 2 : i64, tpu.core_type = #tpu.core_type<tc>, window_params = [{pipeline_mode = #tpu.pipeline_mode<synchronous>, transform_indices = @transform_0, window_bounds = array<i64: 100, 16>}, {pipeline_mode = #tpu.pipeline_mode<synchronous>, transform_indices = @transform_1, window_bounds = array<i64: 16, 128>}, {pipeline_mode = #tpu.pipeline_mode<synchronous>, transform_indices = @transform_2, window_bounds = array<i64: 32, 128>}, {pipeline_mode = #tpu.pipeline_mode<synchronous>, transform_indices = @transform_3, window_bounds = array<i64: 1, 128>}, {pipeline_mode = #tpu.pipeline_mode<synchronous>, transform_indices = @transform_4, window_bounds = array<i64: 32, 4>}, {pipeline_mode = #tpu.pipeline_mode<synchronous>, transform_indices = @transform_5, window_bounds = array<i64: 1, 4>}, {pipeline_mode = #tpu.pipeline_mode<synchronous>, transform_indices = @transform_6, window_bounds = array<i64: 1, 4>}]} {
    %c0 = arith.constant 0 : index
    %0 = memref.load %arg1[%c0] : memref<8xi32, #tpu.memory_space<smem>>
    %1 = arith.index_cast %0 : i32 to index
    %c0_0 = arith.constant 0 : index
    %2 = vector.load %arg2[%1, %c0_0] : memref<100x16xf32, #tpu.memory_space<vmem>>, vector<1x16xf32>
    %c0_1 = arith.constant 0 : index
    %c0_2 = arith.constant 0 : index
    %3 = vector.load %arg9[%c0_1, %c0_2] : memref<8x16xf32, #tpu.memory_space<vmem>>, vector<1x16xf32>
    tpu.vector_store %arg9[%c0_1, %c0_2], %2 {strides = array<i32>} : memref<8x16xf32, #tpu.memory_space<vmem>>, vector<1x16xf32>,
    %c1 = arith.constant 1 : index
    %4 = memref.load %arg1[%c1] : memref<8xi32, #tpu.memory_space<smem>>
    %5 = arith.index_cast %4 : i32 to index
    %c0_3 = arith.constant 0 : index
    %6 = vector.load %arg2[%5, %c0_3] : memref<100x16xf32, #tpu.memory_space<vmem>>, vector<1x16xf32>
    %c1_4 = arith.constant 1 : index
    %c0_5 = arith.constant 0 : index
    %7 = vector.load %arg9[%c1_4, %c0_5] : memref<8x16xf32, #tpu.memory_space<vmem>>, vector<1x16xf32>
    tpu.vector_store %arg9[%c1_4, %c0_5], %6 {strides = array<i32>} : memref<8x16xf32, #tpu.memory_space<vmem>>, vector<1x16xf32>,
    %c2 = arith.constant 2 : index
    %8 = memref.load %arg1[%c2] : memref<8xi32, #tpu.memory_space<smem>>
    %9 = arith.index_cast %8 : i32 to index
    %c0_6 = arith.constant 0 : index
    %10 = vector.load %arg2[%9, %c0_6] : memref<100x16xf32, #tpu.memory_space<vmem>>, vector<1x16xf32>
    %c2_7 = arith.constant 2 : index
    %c0_8 = arith.constant 0 : index
    %11 = vector.load %arg9[%c2_7, %c0_8] : memref<8x16xf32, #tpu.memory_space<vmem>>, vector<1x16xf32>
    tpu.vector_store %arg9[%c2_7, %c0_8], %10 {strides = array<i32>} : memref<8x16xf32, #tpu.memory_space<vmem>>, vector<1x16xf32>,
    %c3 = arith.constant 3 : index
    %12 = memref.load %arg1[%c3] : memref<8xi32, #tpu.memory_space<smem>>
    %13 = arith.index_cast %12 : i32 to index
    %c0_9 = arith.constant 0 : index
    %14 = vector.load %arg2[%13, %c0_9] : memref<100x16xf32, #tpu.memory_space<vmem>>, vector<1x16xf32>
    %c3_10 = arith.constant 3 : index
    %c0_11 = arith.constant 0 : index
    %15 = vector.load %arg9[%c3_10, %c0_11] : memref<8x16xf32, #tpu.memory_space<vmem>>, vector<1x16xf32>
    tpu.vector_store %arg9[%c3_10, %c0_11], %14 {strides = array<i32>} : memref<8x16xf32, #tpu.memory_space<vmem>>, vector<1x16xf32>,
    %c4 = arith.constant 4 : index
    %16 = memref.load %arg1[%c4] : memref<8xi32, #tpu.memory_space<smem>>
    %17 = arith.index_cast %16 : i32 to index
    %c0_12 = arith.constant 0 : index
    %18 = vector.load %arg2[%17, %c0_12] : memref<100x16xf32, #tpu.memory_space<vmem>>, vector<1x16xf32>
    %c4_13 = arith.constant 4 : index
    %c0_14 = arith.constant 0 : index
    %19 = vector.load %arg9[%c4_13, %c0_14] : memref<8x16xf32, #tpu.memory_space<vmem>>, vector<1x16xf32>
    tpu.vector_store %arg9[%c4_13, %c0_14], %18 {strides = array<i32>} : memref<8x16xf32, #tpu.memory_space<vmem>>, vector<1x16xf32>,
    %c5 = arith.constant 5 : index
    %20 = memref.load %arg1[%c5] : memref<8xi32, #tpu.memory_space<smem>>
    %21 = arith.index_cast %20 : i32 to index
    %c0_15 = arith.constant 0 : index
    %22 = vector.load %arg2[%21, %c0_15] : memref<100x16xf32, #tpu.memory_space<vmem>>, vector<1x16xf32>
    %c5_16 = arith.constant 5 : index
    %c0_17 = arith.constant 0 : index
    %23 = vector.load %arg9[%c5_16, %c0_17] : memref<8x16xf32, #tpu.memory_space<vmem>>, vector<1x16xf32>
    tpu.vector_store %arg9[%c5_16, %c0_17], %22 {strides = array<i32>} : memref<8x16xf32, #tpu.memory_space<vmem>>, vector<1x16xf32>,
    %c6 = arith.constant 6 : index
    %24 = memref.load %arg1[%c6] : memref<8xi32, #tpu.memory_space<smem>>
    %25 = arith.index_cast %24 : i32 to index
    %c0_18 = arith.constant 0 : index
    %26 = vector.load %arg2[%25, %c0_18] : memref<100x16xf32, #tpu.memory_space<vmem>>, vector<1x16xf32>
    %c6_19 = arith.constant 6 : index
    %c0_20 = arith.constant 0 : index
    %27 = vector.load %arg9[%c6_19, %c0_20] : memref<8x16xf32, #tpu.memory_space<vmem>>, vector<1x16xf32>
    tpu.vector_store %arg9[%c6_19, %c0_20], %26 {strides = array<i32>} : memref<8x16xf32, #tpu.memory_space<vmem>>, vector<1x16xf32>,
    %c7 = arith.constant 7 : index
    %28 = memref.load %arg1[%c7] : memref<8xi32, #tpu.memory_space<smem>>
    %29 = arith.index_cast %28 : i32 to index
    %c0_21 = arith.constant 0 : index
    %30 = vector.load %arg2[%29, %c0_21] : memref<100x16xf32, #tpu.memory_space<vmem>>, vector<1x16xf32>
    %c7_22 = arith.constant 7 : index
    %c0_23 = arith.constant 0 : index
    %31 = vector.load %arg9[%c7_22, %c0_23] : memref<8x16xf32, #tpu.memory_space<vmem>>, vector<1x16xf32>
    tpu.vector_store %arg9[%c7_22, %c0_23], %30 {strides = array<i32>} : memref<8x16xf32, #tpu.memory_space<vmem>>, vector<1x16xf32>,
    %c0_24 = arith.constant 0 : index
    %c0_25 = arith.constant 0 : index
    %32 = vector.load %arg9[%c0_24, %c0_25] : memref<8x16xf32, #tpu.memory_space<vmem>>, vector<8x16xf32>
    %33 = arith.truncf %32 : vector<8x16xf32> to vector<8x16xbf16>
    %c0_26 = arith.constant 0 : index
    %c0_27 = arith.constant 0 : index
    %34 = vector.load %arg3[%c0_26, %c0_27] : memref<16x128xbf16, #tpu.memory_space<vmem>>, vector<16x128xbf16>
    %cst = arith.constant dense<0.000000e+00> : vector<8x128xf32>
    %35 = tpu.matmul %33, %34, %cst {dimension_numbers = #tpu.dot_dimension_numbers<[1], [0], [0], [1], [0, 0, 1, 1], [], []>} : vector<8x16xbf16>, vector<16x128xbf16>, vector<8x128xf32> -> vector<8x128xf32>
    %c0_28 = arith.constant 0 : index
    %c0_29 = arith.constant 0 : index
    %36 = vector.load %arg5[%c0_28, %c0_29] : memref<1x128xf32, #tpu.memory_space<vmem>>, vector<1x128xf32>
    %37 = vector.broadcast %36 : vector<1x128xf32> to vector<8x128xf32>
    %38 = arith.addf %35, %37 : vector<8x128xf32>
    %c0_30 = arith.constant 0 : index
    %c0_31 = arith.constant 0 : index
    %39 = vector.load %arg10[%c0_30, %c0_31] : memref<8x128xf32, #tpu.memory_space<vmem>>, vector<8x128xf32>
    tpu.vector_store %arg10[%c0_30, %c0_31], %38 {strides = array<i32>} : memref<8x128xf32, #tpu.memory_space<vmem>>, vector<8x128xf32>,
    %c0_32 = arith.constant 0 : index
    %c0_33 = arith.constant 0 : index
    %40 = vector.load %arg4[%c0_32, %c0_33] : memref<32x128xbf16, #tpu.memory_space<vmem>>, vector<32x128xbf16>
    %41 = tpu.iota {dimensions = array<i32: 1>} : vector<1x128xi32>
    %c96_i32 = arith.constant 96 : i32
    %42 = vector.broadcast %c96_i32 : i32 to vector<1x128xi32>
    %43 = arith.cmpi slt, %41, %42 : vector<1x128xi32>
    %cst_34 = arith.constant 0.000000e+00 : f32
    %44 = vector.broadcast %cst_34 : f32 to vector<1x32xf32>
    %cst_35 = arith.constant 0.000000e+00 : f32
    %45 = vector.broadcast %cst_35 : f32 to vector<1x32xf32>
    %c0_36 = arith.constant 0 : index
    %c0_37 = arith.constant 0 : index
    %46 = vector.load %arg10[%c0_36, %c0_37] : memref<8x128xf32, #tpu.memory_space<vmem>>, vector<1x128xf32>
    %47 = arith.truncf %44 : vector<1x32xf32> to vector<1x32xbf16>
    %cst_38 = arith.constant dense<0.000000e+00> : vector<1x128xf32>
    %48 = tpu.matmul %47, %40, %cst_38 {dimension_numbers = #tpu.dot_dimension_numbers<[1], [0], [0], [1], [0, 0, 1, 1], [], []>} : vector<1x32xbf16>, vector<32x128xbf16>, vector<1x128xf32> -> vector<1x128xf32>
    %49 = arith.addf %46, %48 : vector<1x128xf32>
    %50 = arith.negf %49 : vector<1x128xf32>
    %51 = math.exp %50 : vector<1x128xf32>
    %cst_39 = arith.constant 1.000000e+00 : f32
    %52 = vector.broadcast %cst_39 : f32 to vector<1x128xf32>
    %53 = arith.addf %52, %51 : vector<1x128xf32>
    %54 = arith.divf %52, %53 : vector<1x128xf32>
    %55 = math.tanh %49 : vector<1x128xf32>
    %56 = arith.select %43, %54, %55 : vector<1x128xi1>, vector<1x128xf32>
    %57 = vector.extract_strided_slice %56 {offsets = [0, 0], sizes = [1, 32], strides = [1, 1]} : vector<1x128xf32> to vector<1x32xf32>
    %58 = vector.extract_strided_slice %56 {offsets = [0, 32], sizes = [1, 32], strides = [1, 1]} : vector<1x128xf32> to vector<1x32xf32>
    %59 = vector.extract_strided_slice %56 {offsets = [0, 64], sizes = [1, 32], strides = [1, 1]} : vector<1x128xf32> to vector<1x32xf32>
    %60 = vector.extract_strided_slice %56 {offsets = [0, 96], sizes = [1, 32], strides = [1, 1]} : vector<1x128xf32> to vector<1x32xf32>
    %61 = arith.mulf %58, %45 : vector<1x32xf32>
    %62 = arith.mulf %57, %60 : vector<1x32xf32>
    %63 = arith.addf %61, %62 : vector<1x32xf32>
    %64 = math.tanh %63 : vector<1x32xf32>
    %65 = arith.mulf %59, %64 : vector<1x32xf32>
    %c1_40 = arith.constant 1 : index
    %c0_41 = arith.constant 0 : index
    %66 = vector.load %arg10[%c1_40, %c0_41] : memref<8x128xf32, #tpu.memory_space<vmem>>, vector<1x128xf32>
    %67 = arith.truncf %65 : vector<1x32xf32> to vector<1x32xbf16>
    %cst_42 = arith.constant dense<0.000000e+00> : vector<1x128xf32>
    %68 = tpu.matmul %67, %40, %cst_42 {dimension_numbers = #tpu.dot_dimension_numbers<[1], [0], [0], [1], [0, 0, 1, 1], [], []>} : vector<1x32xbf16>, vector<32x128xbf16>, vector<1x128xf32> -> vector<1x128xf32>
    %69 = arith.addf %66, %68 : vector<1x128xf32>
    %70 = arith.negf %69 : vector<1x128xf32>
    %71 = math.exp %70 : vector<1x128xf32>
    %cst_43 = arith.constant 1.000000e+00 : f32
    %72 = vector.broadcast %cst_43 : f32 to vector<1x128xf32>
    %73 = arith.addf %72, %71 : vector<1x128xf32>
    %74 = arith.divf %72, %73 : vector<1x128xf32>
    %75 = math.tanh %69 : vector<1x128xf32>
    %76 = arith.select %43, %74, %75 : vector<1x128xi1>, vector<1x128xf32>
    %77 = vector.extract_strided_slice %76 {offsets = [0, 0], sizes = [1, 32], strides = [1, 1]} : vector<1x128xf32> to vector<1x32xf32>
    %78 = vector.extract_strided_slice %76 {offsets = [0, 32], sizes = [1, 32], strides = [1, 1]} : vector<1x128xf32> to vector<1x32xf32>
    %79 = vector.extract_strided_slice %76 {offsets = [0, 64], sizes = [1, 32], strides = [1, 1]} : vector<1x128xf32> to vector<1x32xf32>
    %80 = vector.extract_strided_slice %76 {offsets = [0, 96], sizes = [1, 32], strides = [1, 1]} : vector<1x128xf32> to vector<1x32xf32>
    %81 = arith.mulf %78, %63 : vector<1x32xf32>
    %82 = arith.mulf %77, %80 : vector<1x32xf32>
    %83 = arith.addf %81, %82 : vector<1x32xf32>
    %84 = math.tanh %83 : vector<1x32xf32>
    %85 = arith.mulf %79, %84 : vector<1x32xf32>
    %c2_44 = arith.constant 2 : index
    %c0_45 = arith.constant 0 : index
    %86 = vector.load %arg10[%c2_44, %c0_45] : memref<8x128xf32, #tpu.memory_space<vmem>>, vector<1x128xf32>
    %87 = arith.truncf %85 : vector<1x32xf32> to vector<1x32xbf16>
    %cst_46 = arith.constant dense<0.000000e+00> : vector<1x128xf32>
    %88 = tpu.matmul %87, %40, %cst_46 {dimension_numbers = #tpu.dot_dimension_numbers<[1], [0], [0], [1], [0, 0, 1, 1], [], []>} : vector<1x32xbf16>, vector<32x128xbf16>, vector<1x128xf32> -> vector<1x128xf32>
    %89 = arith.addf %86, %88 : vector<1x128xf32>
    %90 = arith.negf %89 : vector<1x128xf32>
    %91 = math.exp %90 : vector<1x128xf32>
    %cst_47 = arith.constant 1.000000e+00 : f32
    %92 = vector.broadcast %cst_47 : f32 to vector<1x128xf32>
    %93 = arith.addf %92, %91 : vector<1x128xf32>
    %94 = arith.divf %92, %93 : vector<1x128xf32>
    %95 = math.tanh %89 : vector<1x128xf32>
    %96 = arith.select %43, %94, %95 : vector<1x128xi1>, vector<1x128xf32>
    %97 = vector.extract_strided_slice %96 {offsets = [0, 0], sizes = [1, 32], strides = [1, 1]} : vector<1x128xf32> to vector<1x32xf32>
    %98 = vector.extract_strided_slice %96 {offsets = [0, 32], sizes = [1, 32], strides = [1, 1]} : vector<1x128xf32> to vector<1x32xf32>
    %99 = vector.extract_strided_slice %96 {offsets = [0, 64], sizes = [1, 32], strides = [1, 1]} : vector<1x128xf32> to vector<1x32xf32>
    %100 = vector.extract_strided_slice %96 {offsets = [0, 96], sizes = [1, 32], strides = [1, 1]} : vector<1x128xf32> to vector<1x32xf32>
    %101 = arith.mulf %98, %83 : vector<1x32xf32>
    %102 = arith.mulf %97, %100 : vector<1x32xf32>
    %103 = arith.addf %101, %102 : vector<1x32xf32>
    %104 = math.tanh %103 : vector<1x32xf32>
    %105 = arith.mulf %99, %104 : vector<1x32xf32>
    %c3_48 = arith.constant 3 : index
    %c0_49 = arith.constant 0 : index
    %106 = vector.load %arg10[%c3_48, %c0_49] : memref<8x128xf32, #tpu.memory_space<vmem>>, vector<1x128xf32>
    %107 = arith.truncf %105 : vector<1x32xf32> to vector<1x32xbf16>
    %cst_50 = arith.constant dense<0.000000e+00> : vector<1x128xf32>
    %108 = tpu.matmul %107, %40, %cst_50 {dimension_numbers = #tpu.dot_dimension_numbers<[1], [0], [0], [1], [0, 0, 1, 1], [], []>} : vector<1x32xbf16>, vector<32x128xbf16>, vector<1x128xf32> -> vector<1x128xf32>
    %109 = arith.addf %106, %108 : vector<1x128xf32>
    %110 = arith.negf %109 : vector<1x128xf32>
    %111 = math.exp %110 : vector<1x128xf32>
    %cst_51 = arith.constant 1.000000e+00 : f32
    %112 = vector.broadcast %cst_51 : f32 to vector<1x128xf32>
    %113 = arith.addf %112, %111 : vector<1x128xf32>
    %114 = arith.divf %112, %113 : vector<1x128xf32>
    %115 = math.tanh %109 : vector<1x128xf32>
    %116 = arith.select %43, %114, %115 : vector<1x128xi1>, vector<1x128xf32>
    %117 = vector.extract_strided_slice %116 {offsets = [0, 0], sizes = [1, 32], strides = [1, 1]} : vector<1x128xf32> to vector<1x32xf32>
    %118 = vector.extract_strided_slice %116 {offsets = [0, 32], sizes = [1, 32], strides = [1, 1]} : vector<1x128xf32> to vector<1x32xf32>
    %119 = vector.extract_strided_slice %116 {offsets = [0, 64], sizes = [1, 32], strides = [1, 1]} : vector<1x128xf32> to vector<1x32xf32>
    %120 = vector.extract_strided_slice %116 {offsets = [0, 96], sizes = [1, 32], strides = [1, 1]} : vector<1x128xf32> to vector<1x32xf32>
    %121 = arith.mulf %118, %103 : vector<1x32xf32>
    %122 = arith.mulf %117, %120 : vector<1x32xf32>
    %123 = arith.addf %121, %122 : vector<1x32xf32>
    %124 = math.tanh %123 : vector<1x32xf32>
    %125 = arith.mulf %119, %124 : vector<1x32xf32>
    %c4_52 = arith.constant 4 : index
    %c0_53 = arith.constant 0 : index
    %126 = vector.load %arg10[%c4_52, %c0_53] : memref<8x128xf32, #tpu.memory_space<vmem>>, vector<1x128xf32>
    %127 = arith.truncf %125 : vector<1x32xf32> to vector<1x32xbf16>
    %cst_54 = arith.constant dense<0.000000e+00> : vector<1x128xf32>
    %128 = tpu.matmul %127, %40, %cst_54 {dimension_numbers = #tpu.dot_dimension_numbers<[1], [0], [0], [1], [0, 0, 1, 1], [], []>} : vector<1x32xbf16>, vector<32x128xbf16>, vector<1x128xf32> -> vector<1x128xf32>
    %129 = arith.addf %126, %128 : vector<1x128xf32>
    %130 = arith.negf %129 : vector<1x128xf32>
    %131 = math.exp %130 : vector<1x128xf32>
    %cst_55 = arith.constant 1.000000e+00 : f32
    %132 = vector.broadcast %cst_55 : f32 to vector<1x128xf32>
    %133 = arith.addf %132, %131 : vector<1x128xf32>
    %134 = arith.divf %132, %133 : vector<1x128xf32>
    %135 = math.tanh %129 : vector<1x128xf32>
    %136 = arith.select %43, %134, %135 : vector<1x128xi1>, vector<1x128xf32>
    %137 = vector.extract_strided_slice %136 {offsets = [0, 0], sizes = [1, 32], strides = [1, 1]} : vector<1x128xf32> to vector<1x32xf32>
    %138 = vector.extract_strided_slice %136 {offsets = [0, 32], sizes = [1, 32], strides = [1, 1]} : vector<1x128xf32> to vector<1x32xf32>
    %139 = vector.extract_strided_slice %136 {offsets = [0, 64], sizes = [1, 32], strides = [1, 1]} : vector<1x128xf32> to vector<1x32xf32>
    %140 = vector.extract_strided_slice %136 {offsets = [0, 96], sizes = [1, 32], strides = [1, 1]} : vector<1x128xf32> to vector<1x32xf32>
    %141 = arith.mulf %138, %123 : vector<1x32xf32>
    %142 = arith.mulf %137, %140 : vector<1x32xf32>
    %143 = arith.addf %141, %142 : vector<1x32xf32>
    %144 = math.tanh %143 : vector<1x32xf32>
    %145 = arith.mulf %139, %144 : vector<1x32xf32>
    %c5_56 = arith.constant 5 : index
    %c0_57 = arith.constant 0 : index
    %146 = vector.load %arg10[%c5_56, %c0_57] : memref<8x128xf32, #tpu.memory_space<vmem>>, vector<1x128xf32>
    %147 = arith.truncf %145 : vector<1x32xf32> to vector<1x32xbf16>
    %cst_58 = arith.constant dense<0.000000e+00> : vector<1x128xf32>
    %148 = tpu.matmul %147, %40, %cst_58 {dimension_numbers = #tpu.dot_dimension_numbers<[1], [0], [0], [1], [0, 0, 1, 1], [], []>} : vector<1x32xbf16>, vector<32x128xbf16>, vector<1x128xf32> -> vector<1x128xf32>
    %149 = arith.addf %146, %148 : vector<1x128xf32>
    %150 = arith.negf %149 : vector<1x128xf32>
    %151 = math.exp %150 : vector<1x128xf32>
    %cst_59 = arith.constant 1.000000e+00 : f32
    %152 = vector.broadcast %cst_59 : f32 to vector<1x128xf32>
    %153 = arith.addf %152, %151 : vector<1x128xf32>
    %154 = arith.divf %152, %153 : vector<1x128xf32>
    %155 = math.tanh %149 : vector<1x128xf32>
    %156 = arith.select %43, %154, %155 : vector<1x128xi1>, vector<1x128xf32>
    %157 = vector.extract_strided_slice %156 {offsets = [0, 0], sizes = [1, 32], strides = [1, 1]} : vector<1x128xf32> to vector<1x32xf32>
    %158 = vector.extract_strided_slice %156 {offsets = [0, 32], sizes = [1, 32], strides = [1, 1]} : vector<1x128xf32> to vector<1x32xf32>
    %159 = vector.extract_strided_slice %156 {offsets = [0, 64], sizes = [1, 32], strides = [1, 1]} : vector<1x128xf32> to vector<1x32xf32>
    %160 = vector.extract_strided_slice %156 {offsets = [0, 96], sizes = [1, 32], strides = [1, 1]} : vector<1x128xf32> to vector<1x32xf32>
    %161 = arith.mulf %158, %143 : vector<1x32xf32>
    %162 = arith.mulf %157, %160 : vector<1x32xf32>
    %163 = arith.addf %161, %162 : vector<1x32xf32>
    %164 = math.tanh %163 : vector<1x32xf32>
    %165 = arith.mulf %159, %164 : vector<1x32xf32>
    %c6_60 = arith.constant 6 : index
    %c0_61 = arith.constant 0 : index
    %166 = vector.load %arg10[%c6_60, %c0_61] : memref<8x128xf32, #tpu.memory_space<vmem>>, vector<1x128xf32>
    %167 = arith.truncf %165 : vector<1x32xf32> to vector<1x32xbf16>
    %cst_62 = arith.constant dense<0.000000e+00> : vector<1x128xf32>
    %168 = tpu.matmul %167, %40, %cst_62 {dimension_numbers = #tpu.dot_dimension_numbers<[1], [0], [0], [1], [0, 0, 1, 1], [], []>} : vector<1x32xbf16>, vector<32x128xbf16>, vector<1x128xf32> -> vector<1x128xf32>
    %169 = arith.addf %166, %168 : vector<1x128xf32>
    %170 = arith.negf %169 : vector<1x128xf32>
    %171 = math.exp %170 : vector<1x128xf32>
    %cst_63 = arith.constant 1.000000e+00 : f32
    %172 = vector.broadcast %cst_63 : f32 to vector<1x128xf32>
    %173 = arith.addf %172, %171 : vector<1x128xf32>
    %174 = arith.divf %172, %173 : vector<1x128xf32>
    %175 = math.tanh %169 : vector<1x128xf32>
    %176 = arith.select %43, %174, %175 : vector<1x128xi1>, vector<1x128xf32>
    %177 = vector.extract_strided_slice %176 {offsets = [0, 0], sizes = [1, 32], strides = [1, 1]} : vector<1x128xf32> to vector<1x32xf32>
    %178 = vector.extract_strided_slice %176 {offsets = [0, 32], sizes = [1, 32], strides = [1, 1]} : vector<1x128xf32> to vector<1x32xf32>
    %179 = vector.extract_strided_slice %176 {offsets = [0, 64], sizes = [1, 32], strides = [1, 1]} : vector<1x128xf32> to vector<1x32xf32>
    %180 = vector.extract_strided_slice %176 {offsets = [0, 96], sizes = [1, 32], strides = [1, 1]} : vector<1x128xf32> to vector<1x32xf32>
    %181 = arith.mulf %178, %163 : vector<1x32xf32>
    %182 = arith.mulf %177, %180 : vector<1x32xf32>
    %183 = arith.addf %181, %182 : vector<1x32xf32>
    %184 = math.tanh %183 : vector<1x32xf32>
    %185 = arith.mulf %179, %184 : vector<1x32xf32>
    %c7_64 = arith.constant 7 : index
    %c0_65 = arith.constant 0 : index
    %186 = vector.load %arg10[%c7_64, %c0_65] : memref<8x128xf32, #tpu.memory_space<vmem>>, vector<1x128xf32>
    %187 = arith.truncf %185 : vector<1x32xf32> to vector<1x32xbf16>
    %cst_66 = arith.constant dense<0.000000e+00> : vector<1x128xf32>
    %188 = tpu.matmul %187, %40, %cst_66 {dimension_numbers = #tpu.dot_dimension_numbers<[1], [0], [0], [1], [0, 0, 1, 1], [], []>} : vector<1x32xbf16>, vector<32x128xbf16>, vector<1x128xf32> -> vector<1x128xf32>
    %189 = arith.addf %186, %188 : vector<1x128xf32>
    %190 = arith.negf %189 : vector<1x128xf32>
    %191 = math.exp %190 : vector<1x128xf32>
    %cst_67 = arith.constant 1.000000e+00 : f32
    %192 = vector.broadcast %cst_67 : f32 to vector<1x128xf32>
    %193 = arith.addf %192, %191 : vector<1x128xf32>
    %194 = arith.divf %192, %193 : vector<1x128xf32>
    %195 = math.tanh %189 : vector<1x128xf32>
    %196 = arith.select %43, %194, %195 : vector<1x128xi1>, vector<1x128xf32>
    %197 = vector.extract_strided_slice %196 {offsets = [0, 0], sizes = [1, 32], strides = [1, 1]} : vector<1x128xf32> to vector<1x32xf32>
    %198 = vector.extract_strided_slice %196 {offsets = [0, 32], sizes = [1, 32], strides = [1, 1]} : vector<1x128xf32> to vector<1x32xf32>
    %199 = vector.extract_strided_slice %196 {offsets = [0, 64], sizes = [1, 32], strides = [1, 1]} : vector<1x128xf32> to vector<1x32xf32>
    %200 = vector.extract_strided_slice %196 {offsets = [0, 96], sizes = [1, 32], strides = [1, 1]} : vector<1x128xf32> to vector<1x32xf32>
    %201 = arith.mulf %198, %183 : vector<1x32xf32>
    %202 = arith.mulf %197, %200 : vector<1x32xf32>
    %203 = arith.addf %201, %202 : vector<1x32xf32>
    %204 = math.tanh %203 : vector<1x32xf32>
    %205 = arith.mulf %199, %204 : vector<1x32xf32>
    %c0_68 = arith.constant 0 : index
    %c0_69 = arith.constant 0 : index
    %206 = vector.load %arg6[%c0_68, %c0_69] : memref<32x4xf32, #tpu.memory_space<vmem>>, vector<32x4xf32>
    %cst_70 = arith.constant dense<0.000000e+00> : vector<1x4xf32>
    %207 = tpu.matmul %205, %206, %cst_70 {dimension_numbers = #tpu.dot_dimension_numbers<[1], [0], [0], [1], [0, 0, 1, 1], [], []>} : vector<1x32xf32>, vector<32x4xf32>, vector<1x4xf32> -> vector<1x4xf32>
    %c0_71 = arith.constant 0 : index
    %c0_72 = arith.constant 0 : index
    %208 = vector.load %arg7[%c0_71, %c0_72] : memref<1x4xf32, #tpu.memory_space<vmem>>, vector<1x4xf32>
    %209 = arith.addf %207, %208 : vector<1x4xf32>
    %cst_73 = arith.constant dense<0xFF800000> : vector<1xf32>
    %210 = vector.multi_reduction <maximumf>, %209, %cst_73 [1] : vector<1x4xf32> to vector<1xf32>
    %211 = vector.shape_cast %210 : vector<1xf32> to vector<1x1xf32>
    %212 = vector.broadcast %211 : vector<1x1xf32> to vector<1x4xf32>
    %213 = arith.subf %209, %212 : vector<1x4xf32>
    %214 = math.exp %213 : vector<1x4xf32>
    %cst_74 = arith.constant dense<0.000000e+00> : vector<1xf32>
    %215 = vector.multi_reduction <add>, %214, %cst_74 [1] : vector<1x4xf32> to vector<1xf32>
    %216 = vector.shape_cast %215 : vector<1xf32> to vector<1x1xf32>
    %217 = vector.broadcast %216 : vector<1x1xf32> to vector<1x4xf32>
    %218 = arith.divf %214, %217 : vector<1x4xf32>
    %c0_75 = arith.constant 0 : index
    %c0_76 = arith.constant 0 : index
    %219 = vector.load %arg8[%c0_75, %c0_76] : memref<1x4xf32, #tpu.memory_space<vmem>>, vector<1x4xf32>
    tpu.vector_store %arg8[%c0_75, %c0_76], %218 {strides = array<i32>} : memref<1x4xf32, #tpu.memory_space<vmem>>, vector<1x4xf32>,
    return
  }
  func.func @transform_0(%arg0: i32, %arg1: memref<8xi32, #tpu.memory_space<smem>>) -> (i32, i32) {
    %c0_i32 = arith.constant 0 : i32
    %c0_i32_0 = arith.constant 0 : i32
    %c0_i32_1 = arith.constant 0 : i32
    return %c0_i32, %c0_i32_0 : i32, i32
  }
  func.func @transform_1(%arg0: i32, %arg1: memref<8xi32, #tpu.memory_space<smem>>) -> (i32, i32) {
    %c0_i32 = arith.constant 0 : i32
    %c0_i32_0 = arith.constant 0 : i32
    %c0_i32_1 = arith.constant 0 : i32
    return %c0_i32, %c0_i32_0 : i32, i32
  }
  func.func @transform_2(%arg0: i32, %arg1: memref<8xi32, #tpu.memory_space<smem>>) -> (i32, i32) {
    %c0_i32 = arith.constant 0 : i32
    %c0_i32_0 = arith.constant 0 : i32
    %c0_i32_1 = arith.constant 0 : i32
    return %c0_i32, %c0_i32_0 : i32, i32
  }
  func.func @transform_3(%arg0: i32, %arg1: memref<8xi32, #tpu.memory_space<smem>>) -> (i32, i32) {
    %c0_i32 = arith.constant 0 : i32
    %c0_i32_0 = arith.constant 0 : i32
    %c0_i32_1 = arith.constant 0 : i32
    return %c0_i32, %c0_i32_0 : i32, i32
  }
  func.func @transform_4(%arg0: i32, %arg1: memref<8xi32, #tpu.memory_space<smem>>) -> (i32, i32) {
    %c0_i32 = arith.constant 0 : i32
    %c0_i32_0 = arith.constant 0 : i32
    %c0_i32_1 = arith.constant 0 : i32
    return %c0_i32, %c0_i32_0 : i32, i32
  }
  func.func @transform_5(%arg0: i32, %arg1: memref<8xi32, #tpu.memory_space<smem>>) -> (i32, i32) {
    %c0_i32 = arith.constant 0 : i32
    %c0_i32_0 = arith.constant 0 : i32
    %c0_i32_1 = arith.constant 0 : i32
    return %c0_i32, %c0_i32_0 : i32, i32
  }
  func.func @transform_6(%arg0: i32, %arg1: memref<8xi32, #tpu.memory_space<smem>>) -> (i32, i32) {
    %c0_i32 = arith.constant 0 : i32
    %c0_i32_0 = arith.constant 0 : i32
    %c0_i32_1 = arith.constant 0 : i32
    return %c0_i32, %c0_i32_0 : i32, i32
  }
}

</mosaic_0001>

<bundles_post_ra>
// kernel: lstm_classifier_forward.1
= control target key start
LH: loop header
LB: loop body
LE: loop exit
PB: predicated region body
PF: predicated region fallthrough
CT: control target
= control target key end

     0   :  { %s1339_s0 = inlined_call_operand.vmem [shape: s32[8], index: 0, kind: input, shape index: {}]   ;;  %s1340_s1 = inlined_call_operand.vmem [shape: f32[100,16], index: 1, kind: input, shape index: {}]   ;;  %s1341_s2 = inlined_call_operand.vmem [shape: bf16[16,128], index: 2, kind: input, shape index: {}]   ;;  %s1342_s3 = inlined_call_operand.vmem [shape: bf16[32,128], index: 3, kind: input, shape index: {}]   ;;  %s1343_s4 = inlined_call_operand.vmem [shape: f32[1,128], index: 4, kind: input, shape index: {}]   ;;  %s1344_s5 = inlined_call_operand.vmem [shape: f32[32,4], index: 5, kind: input, shape index: {}]   ;;  %s1345_s6 = inlined_call_operand.vmem [shape: f32[1,4], index: 6, kind: input, shape index: {}]   ;;  %s1346_s7 = inlined_call_operand.hbm [shape: f32[1,4], index: 7, kind: output, shape index: {}]  }
   0x1   :  { %s12_s26 = sshll.u32 %s1339_s0, 4  ;;  %s13_s26 = int_to_ptr.vmem [resolvable:$true] %s12_s26 }
   0x2   :  { %s1068_s27 = scalar_lea.vmem %s13_s26, 16  ;;  %p1073_p1 = scmp.lt.s32.totalorder %s13_s26, %s13_s26 }
   0x3   :  { %p1069_p0 = scmp.ne.s32.totalorder %s13_s26, %s1068_s27  ;;  %p1074_p2 = scmp.lt.s32.totalorder %s1068_s27, %s1068_s27 }
   0x5   :  { %p1075_p3 = por %p1074_p2, %p1073_p1 }
   0x7   :  { %p1076_p4 = pnand %p1075_p3, %p1069_p0 }
   0x9   :  { %1079 = shalt.err (!%p1076_p4)  }
   0xa   :  { %s1104_s28 = smov [#allocation5]  }
   0xb   :  { %15 = dma.vmem_to_smem %s13_s26, 16, %s1104_s28, [#allocation4] }
   0xc   :  { %1100 = dma.done.wait [#allocation4], 16 }
   0xd   :  { %1101 = vsyncadd [#allocation4], 4294967280 }
   0xe   :  { %17 = sfence }
   0xf   :  { %v997_v0 = vld [vmem:[%s1341_s2] sm:$0xff]   ;;  %v1105_v1 = vmov 0.0   ;;  %v1162_v2 = vld [vmem:[%s1342_s3 + $0x8] sm:$0xff]   ;;  %vm1106_vm0 = vmmov 0   ;;  %s32_s9 = sld [smem:[#allocation5]] }
  0x10   :  { %909 = vmatprep.subr.bf16.mxu0 %v1105_v1  ;;  %915 = vmatprep.subr.bf16.mxu1 %v1105_v1  ;;  %s850_s10 = sld [smem:[#allocation5 + $0x1]]  ;;  %v1170_v3 = vld [vmem:[%s1342_s3] sm:$0xff]  }
  0x11   :  { %910 = vmatpush3.bf16.msra.mxu0 %v997_v0  ;;  %911 = vmatprep.mubr.msk.bf16.mxu0 %vm1106_vm0, %v1105_v1  ;;  %s851_s12 = sld [smem:[#allocation5 + $0x2]] }
  0x12   :  { %916 = vmatpush3.bf16.msra.mxu1 %v1162_v2  ;;  %919 = vmatprep.mubr.msk.bf16.mxu1 %vm1106_vm0, %v1105_v1 }
  0x13   :  { %917 = vmatprep.subr.bf16.mxu1 %v1105_v1  ;;  %923 = vmatprep.subr.bf16.mxu0 %v1105_v1 }
  0x14   :  { %18 = vsyncpa [#allocation7], 0  ;;  %s852_s13 = sld [smem:[#allocation5 + $0x3]]  ;;  %vm35_vm1 = vcmask 122880   ;;  %v1107_v6 = vmov 0   ;;  %vm82_vm2 = vcmask 130048   ;;  %v131_v30 = vlaneseq }
  0x15   :  { %s853_s14 = sld [smem:[#allocation5 + $0x4]]  ;;  %s33_s3 = scalar_lea.vmem %s1340_s1, %s32_s9  ;;  %v857_v19 = vld [vmem:[%s1343_s4] ss:$0 sm:$0xff]  ;;  %vm147_vm4 = vcmask 261120   ;;  %vm815_vm5 = vcmask 24576  }
  0x16   :  { %s854_s15 = sld [smem:[#allocation5 + $0x5]]  ;;  %918 = vmatpush3.bf16.msra.mxu1 %v1170_v3  ;;  %v34_v4 = vld [vmem:[%s33_s3] sm:$0x1]  ;;  %s38_s21 = scalar_lea.vmem %s1340_s1, %s850_s10  ;;  %v1225_v31 = vand.u32 127, %v131_v30 }
  0x17   :  { %s855_s18 = sld [smem:[#allocation5 + $0x6]]  ;;  %931 = vmatprep.subr.bf16.mxu1 %v1105_v1  ;;  %36 = vst.msk [vmem:[#allocation2] sm:$0x1] %vm35_vm1, %v34_v4  ;;  %v39_v5 = vld [vmem:[%s38_s21] sm:$0x1]  ;;  %s42_s25 = scalar_lea.vmem %s1340_s1, %s851_s12 }
  0x18   :  { %s856_s22 = sld [smem:[#allocation5 + $0x7]]  ;;  %40 = vst.msk [vmem:[#allocation2 + $0x1] sm:$0x1] %vm35_vm1, %v39_v5  ;;  %v43_v7 = vld [vmem:[%s42_s25] sm:$0x1]  ;;  %vm133_vm3 = vcmp.lt.s32.totalorder %v1225_v31, 96 }
  0x19   :  { %920 = vmatmul.mubr.bf16.vlgmr.msra.gmra.mxu1 %v1107_v6  ;;  %44 = vst.msk [vmem:[#allocation2 + $0x2] sm:$0x1] %vm35_vm1, %v43_v7  ;;  %s1108_s4 = smov 32   ;;  %s1109_s17 = smov 64   ;;  %v736_v31 = vld [vmem:[%s1344_s5 + $0x8] sm:$0xff] }
  0x1a   :  { %s46_s28 = scalar_lea.vmem %s1340_s1, %s852_s13  ;;  %932 = vmatpush3.bf16.msra.mxu1 %v1162_v2  ;;  %935 = vmatprep.mubr.msk.bf16.mxu1 %vm1106_vm0, %v1105_v1 }
  0x1b   :  { %v47_v8 = vld [vmem:[%s46_s28] sm:$0x1]  ;;  %s50_s0 = scalar_lea.vmem %s1340_s1, %s853_s14  ;;  %933 = vmatprep.subr.bf16.mxu1 %v1105_v1 }
  0x1c   :  { %48 = vst.msk [vmem:[#allocation2 + $0x3] sm:$0x1] %vm35_vm1, %v47_v8  ;;  %v51_v9 = vld [vmem:[%s50_s0] sm:$0x1]  ;;  %s54_s10 = scalar_lea.vmem %s1340_s1, %s854_s15 }
  0x1d   :  { %52 = vst.msk [vmem:[#allocation2 + $0x4] sm:$0x1] %vm35_vm1, %v51_v9  ;;  %v55_v10 = vld [vmem:[%s54_s10] sm:$0x1]  ;;  %s58_s12 = scalar_lea.vmem %s1340_s1, %s855_s18 }
  0x1e   :  { %56 = vst.msk [vmem:[#allocation2 + $0x5] sm:$0x1] %vm35_vm1, %v55_v10  ;;  %v59_v11 = vld [vmem:[%s58_s12] sm:$0x1]  ;;  %s62_s16 = scalar_lea.vmem %s1340_s1, %s856_s22  ;;  %934 = vmatpush3.bf16.msra.mxu1 %v1170_v3 }
  0x1f   :  { %60 = vst.msk [vmem:[#allocation2 + $0x6] sm:$0x1] %vm35_vm1, %v59_v11  ;;  %v63_v12 = vld [vmem:[%s62_s16] sm:$0x1]  ;;  %947 = vmatprep.subr.bf16.mxu1 %v1105_v1 }
  0x20   :  { %64 = vst.msk [vmem:[#allocation2 + $0x7] sm:$0x1] %vm35_vm1, %v63_v12 }
  0x27   :  { %v65_v13 = vld [vmem:[#allocation2] sm:$0xff] }
  0x28   :  { %v66_v14 = vpack.c.bf16 %v65_v13, %v65_v13 }
  0x2a   :  { %912 = vmatmul.mubr.msk.bf16.vlgmr.msra.gmra.mxu0 %vm82_vm2, %v66_v14 }
  0x2b   :  { %924 = vmatpush3.bf16.msra.mxu0 %v1162_v2  ;;  %927 = vmatprep.mubr.msk.bf16.mxu0 %vm1106_vm0, %v1105_v1 }
  0x2c   :  { %925 = vmatprep.subr.bf16.mxu0 %v1105_v1 }
  0x2f   :  { %926 = vmatpush3.bf16.msra.mxu0 %v1170_v3 }
  0x30   :  { %939 = vmatprep.subr.bf16.mxu0 %v1105_v1 }
  0xd9   :  { %v185_v15 = vpop.f32.mrf.mxu1 }
  0xdb   :  { %v921_v16 = vpop.f32.mrf.mxu1 }
  0xdd   :  { %v188_v17 = vpop.f32.mrf.mxu1 }
  0xdf   :  { %v922_v18 = vpop.f32.mrf.mxu1 }
  0xea   :  { %v120_v20 = vpop.f32.mrf.mxu0 }
  0xeb   :  { %v121_v21 = vadd.f32 %v857_v19, %v120_v20 }
  0xec   :  { %v913_v22 = vpop.f32.mrf.mxu0 }
  0xed   :  { %126 = vst [vmem:[#allocation3] sm:$0xff] %v121_v21 }
  0xee   :  { %v123_v23 = vpop.f32.mrf.mxu0 }
  0xf0   :  { %v914_v24 = vpop.f32.mrf.mxu0 }
  0xf4   :  { %v134_v25 = vld [vmem:[#allocation3] sm:$0x1]  ;;  %v217_v45 = vld [vmem:[#allocation3 + $0x1] sm:$0x1]  ;;  %v291_v6 = vld [vmem:[#allocation3 + $0x2] sm:$0x1] }
  0xf5   :  { %v191_v26 = vadd.f32 %v185_v15, %v134_v25 }
  0xf7   :  { %v862_v27 = vmul.f32 -1.442695, %v191_v26 }
  0xf9   :  { %1000 = vpow2.f32 %v862_v27 }
  0xfa   :  { %1002 = vtanh.f32 %v191_v26 }
 0x106   :  { %v1001_v28 = vpop.eup %1000 }
 0x107   :  { %v195_v29 = vadd.f32 1.0, %v1001_v28  ;;  %v1003_v32 = vpop.eup %1002  ;;  %v365_v28 = vld [vmem:[#allocation3 + $0x3] sm:$0x1] }
 0x109   :  { %1004 = vrcp.f32 %v195_v29 }
 0x116   :  { %v1005_v33 = vpop.eup %1004 }
 0x117   :  { %v199_v34 = vsel %vm133_vm3, %v1005_v33, %v1003_v32 }
 0x118   :  { %202 = vrot.lane.b32.xlu0 %v199_v34, %s1108_s4  ;;  %v200_v37 = vmul.f32 0.0, %v199_v34 }
 0x18a   :  { %v203_v35 = vpop.permute.xlu0 %202 }
 0x18b   :  { %v205_v36 = vmul.f32 %v203_v35, %v199_v34 }
 0x18d   :  { %207 = vrot.lane.b32.xlu0 %v205_v36, %s1108_s4 }
 0x1ff   :  { %v208_v38 = vpop.permute.xlu0 %207 }
 0x200   :  { %v210_v39 = vadd.f32 %v208_v38, %v200_v37 }
 0x202   :  { %1006 = vtanh.f32 %v210_v39 }
 0x20f   :  { %v1007_v40 = vpop.eup %1006 }
 0x210   :  { %213 = vrot.lane.b32.xlu1 %v1007_v40, %s1108_s4 }
 0x282   :  { %v214_v41 = vpop.permute.xlu1 %213 }
 0x283   :  { %v216_v42 = vmul.f32 %v214_v41, %v199_v34 }
 0x285   :  { %v218_v43 = vpack.c.bf16 %v216_v42, %v216_v42 }
 0x287   :  { %220 = vrot.lane.b32.xlu1 %v218_v43, %s1109_s17 }
 0x2f9   :  { %v221_v44 = vpop.permute.xlu1 %220 }
 0x2fa   :  { %928 = vmatmul.mubr.msk.bf16.vlgmr.msra.gmra.mxu0 %vm147_vm4, %v221_v44 }
 0x2fb   :  { %940 = vmatpush3.bf16.msra.mxu0 %v1162_v2  ;;  %943 = vmatprep.mubr.msk.bf16.mxu0 %vm1106_vm0, %v1105_v1 }
 0x2fc   :  { %941 = vmatprep.subr.bf16.mxu0 %v1105_v1 }
 0x2ff   :  { %942 = vmatpush3.bf16.msra.mxu0 %v1170_v3 }
 0x300   :  { %955 = vmatprep.subr.bf16.mxu0 %v1105_v1 }
 0x3ba   :  { %v259_v46 = vpop.f32.mrf.mxu0 }
 0x3bb   :  { %v265_v47 = vadd.f32 %v259_v46, %v217_v45 }
 0x3bc   :  { %v929_v48 = vpop.f32.mrf.mxu0 }
 0x3bd   :  { %v864_v49 = vmul.f32 -1.442695, %v265_v47 }
 0x3be   :  { %v262_v50 = vpop.f32.mrf.mxu0 }
 0x3bf   :  { %1008 = vpow2.f32 %v864_v49 }
 0x3c0   :  { %v930_v51 = vpop.f32.mrf.mxu0  ;;  %1010 = vtanh.f32 %v265_v47 }
 0x3c1   :  { %v439_v51 = vld [vmem:[#allocation3 + $0x4] sm:$0x1] }
 0x3cc   :  { %v1009_v52 = vpop.eup %1008 }
 0x3cd   :  { %v269_v53 = vadd.f32 1.0, %v1009_v52  ;;  %v1011_v54 = vpop.eup %1010 }
 0x3cf   :  { %1012 = vrcp.f32 %v269_v53 }
 0x3dc   :  { %v1013_v55 = vpop.eup %1012 }
 0x3dd   :  { %v273_v56 = vsel %vm133_vm3, %v1013_v55, %v1011_v54 }
 0x3de   :  { %276 = vrot.lane.b32.xlu0 %v273_v56, %s1108_s4  ;;  %v274_v59 = vmul.f32 %v273_v56, %v210_v39 }
 0x450   :  { %v277_v57 = vpop.permute.xlu0 %276 }
 0x451   :  { %v279_v58 = vmul.f32 %v277_v57, %v273_v56 }
 0x453   :  { %281 = vrot.lane.b32.xlu1 %v279_v58, %s1108_s4 }
 0x4c5   :  { %v282_v60 = vpop.permute.xlu1 %281 }
 0x4c6   :  { %v284_v61 = vadd.f32 %v282_v60, %v274_v59 }
 0x4c8   :  { %1014 = vtanh.f32 %v284_v61 }
 0x4d5   :  { %v1015_v62 = vpop.eup %1014 }
 0x4d6   :  { %287 = vrot.lane.b32.xlu0 %v1015_v62, %s1108_s4 }
 0x548   :  { %v288_v63 = vpop.permute.xlu0 %287 }
 0x549   :  { %v290_v0 = vmul.f32 %v288_v63, %v273_v56 }
 0x54b   :  { %v292_v4 = vpack.c.bf16 %v290_v0, %v290_v0 }
 0x54d   :  { %294 = vrot.lane.b32.xlu1 %v292_v4, %s1109_s17 }
 0x5bf   :  { %v295_v5 = vpop.permute.xlu1 %294 }
 0x5c0   :  { %936 = vmatmul.mubr.msk.bf16.vlgmr.msra.gmra.mxu1 %vm147_vm4, %v295_v5 }
 0x5c1   :  { %948 = vmatpush3.bf16.msra.mxu1 %v1162_v2  ;;  %951 = vmatprep.mubr.msk.bf16.mxu1 %vm1106_vm0, %v1105_v1 }
 0x5c2   :  { %949 = vmatprep.subr.bf16.mxu1 %v1105_v1 }
 0x5c5   :  { %950 = vmatpush3.bf16.msra.mxu1 %v1170_v3 }
 0x5c6   :  { %963 = vmatprep.subr.bf16.mxu1 %v1105_v1 }
 0x680   :  { %v333_v7 = vpop.f32.mrf.mxu1 }
 0x681   :  { %v339_v8 = vadd.f32 %v333_v7, %v291_v6 }
 0x682   :  { %v937_v9 = vpop.f32.mrf.mxu1 }
 0x683   :  { %v866_v10 = vmul.f32 -1.442695, %v339_v8 }
 0x684   :  { %v336_v11 = vpop.f32.mrf.mxu1 }
 0x685   :  { %1016 = vpow2.f32 %v866_v10 }
 0x686   :  { %v938_v12 = vpop.f32.mrf.mxu1  ;;  %1018 = vtanh.f32 %v339_v8 }
 0x687   :  { %v513_v12 = vld [vmem:[#allocation3 + $0x5] sm:$0x1] }
 0x692   :  { %v1017_v13 = vpop.eup %1016 }
 0x693   :  { %v343_v14 = vadd.f32 1.0, %v1017_v13  ;;  %v1019_v15 = vpop.eup %1018 }
 0x695   :  { %1020 = vrcp.f32 %v343_v14 }
 0x6a2   :  { %v1021_v16 = vpop.eup %1020 }
 0x6a3   :  { %v347_v17 = vsel %vm133_vm3, %v1021_v16, %v1019_v15 }
 0x6a4   :  { %350 = vrot.lane.b32.xlu0 %v347_v17, %s1108_s4  ;;  %v348_v20 = vmul.f32 %v347_v17, %v284_v61 }
 0x716   :  { %v351_v18 = vpop.permute.xlu0 %350 }
 0x717   :  { %v353_v19 = vmul.f32 %v351_v18, %v347_v17 }
 0x719   :  { %355 = vrot.lane.b32.xlu1 %v353_v19, %s1108_s4 }
 0x78b   :  { %v356_v21 = vpop.permute.xlu1 %355 }
 0x78c   :  { %v358_v22 = vadd.f32 %v356_v21, %v348_v20 }
 0x78e   :  { %1022 = vtanh.f32 %v358_v22 }
 0x79b   :  { %v1023_v23 = vpop.eup %1022 }
 0x79c   :  { %361 = vrot.lane.b32.xlu0 %v1023_v23, %s1108_s4 }
 0x80e   :  { %v362_v24 = vpop.permute.xlu0 %361 }
 0x80f   :  { %v364_v25 = vmul.f32 %v362_v24, %v347_v17 }
 0x811   :  { %v366_v26 = vpack.c.bf16 %v364_v25, %v364_v25 }
 0x813   :  { %368 = vrot.lane.b32.xlu1 %v366_v26, %s1109_s17 }
 0x885   :  { %v369_v27 = vpop.permute.xlu1 %368 }
 0x886   :  { %944 = vmatmul.mubr.msk.bf16.vlgmr.msra.gmra.mxu0 %vm147_vm4, %v369_v27 }
 0x887   :  { %956 = vmatpush3.bf16.msra.mxu0 %v1162_v2  ;;  %959 = vmatprep.mubr.msk.bf16.mxu0 %vm1106_vm0, %v1105_v1 }
 0x888   :  { %957 = vmatprep.subr.bf16.mxu0 %v1105_v1 }
 0x88b   :  { %958 = vmatpush3.bf16.msra.mxu0 %v1170_v3 }
 0x88c   :  { %971 = vmatprep.subr.bf16.mxu0 %v1105_v1 }
 0x946   :  { %v407_v29 = vpop.f32.mrf.mxu0 }
 0x947   :  { %v413_v30 = vadd.f32 %v407_v29, %v365_v28 }
 0x948   :  { %v945_v32 = vpop.f32.mrf.mxu0 }
 0x949   :  { %v868_v33 = vmul.f32 -1.442695, %v413_v30 }
 0x94a   :  { %v410_v34 = vpop.f32.mrf.mxu0 }
 0x94b   :  { %1024 = vpow2.f32 %v868_v33  ;;  %v587_v33 = vld [vmem:[#allocation3 + $0x6] sm:$0x1] }
 0x94c   :  { %v946_v35 = vpop.f32.mrf.mxu0  ;;  %1026 = vtanh.f32 %v413_v30 }
 0x958   :  { %v1025_v36 = vpop.eup %1024 }
 0x959   :  { %v417_v37 = vadd.f32 1.0, %v1025_v36  ;;  %v1027_v38 = vpop.eup %1026 }
 0x95b   :  { %1028 = vrcp.f32 %v417_v37 }
 0x968   :  { %v1029_v39 = vpop.eup %1028 }
 0x969   :  { %v421_v40 = vsel %vm133_vm3, %v1029_v39, %v1027_v38 }
 0x96a   :  { %424 = vrot.lane.b32.xlu0 %v421_v40, %s1108_s4  ;;  %v422_v43 = vmul.f32 %v421_v40, %v358_v22 }
 0x9dc   :  { %v425_v41 = vpop.permute.xlu0 %424 }
 0x9dd   :  { %v427_v42 = vmul.f32 %v425_v41, %v421_v40 }
 0x9df   :  { %429 = vrot.lane.b32.xlu1 %v427_v42, %s1108_s4 }
 0xa51   :  { %v430_v44 = vpop.permute.xlu1 %429 }
 0xa52   :  { %v432_v45 = vadd.f32 %v430_v44, %v422_v43 }
 0xa54   :  { %1030 = vtanh.f32 %v432_v45 }
 0xa61   :  { %v1031_v46 = vpop.eup %1030 }
 0xa62   :  { %435 = vrot.lane.b32.xlu0 %v1031_v46, %s1108_s4 }
 0xad4   :  { %v436_v47 = vpop.permute.xlu0 %435 }
 0xad5   :  { %v438_v48 = vmul.f32 %v436_v47, %v421_v40 }
 0xad7   :  { %v440_v49 = vpack.c.bf16 %v438_v48, %v438_v48 }
 0xad9   :  { %442 = vrot.lane.b32.xlu1 %v440_v49, %s1109_s17 }
 0xb4b   :  { %v443_v50 = vpop.permute.xlu1 %442 }
 0xb4c   :  { %952 = vmatmul.mubr.msk.bf16.vlgmr.msra.gmra.mxu1 %vm147_vm4, %v443_v50 }
 0xb4d   :  { %964 = vmatpush3.bf16.msra.mxu1 %v1162_v2  ;;  %967 = vmatprep.mubr.msk.bf16.mxu1 %vm1106_vm0, %v1105_v1 }
 0xb4e   :  { %965 = vmatprep.subr.bf16.mxu1 %v1105_v1 }
 0xb51   :  { %966 = vmatpush3.bf16.msra.mxu1 %v1170_v3 }
 0xb52   :  { %979 = vmatprep.subr.mxu1 %v1105_v1 }
 0xc0c   :  { %v481_v52 = vpop.f32.mrf.mxu1 }
 0xc0d   :  { %v487_v53 = vadd.f32 %v481_v52, %v439_v51 }
 0xc0e   :  { %v953_v54 = vpop.f32.mrf.mxu1 }
 0xc0f   :  { %v870_v55 = vmul.f32 -1.442695, %v487_v53 }
 0xc10   :  { %v484_v56 = vpop.f32.mrf.mxu1 }
 0xc11   :  { %1032 = vpow2.f32 %v870_v55  ;;  %v661_v55 = vld [vmem:[#allocation3 + $0x7] sm:$0x1] }
 0xc12   :  { %v954_v57 = vpop.f32.mrf.mxu1  ;;  %1034 = vtanh.f32 %v487_v53 }
 0xc1e   :  { %v1033_v58 = vpop.eup %1032 }
 0xc1f   :  { %v491_v59 = vadd.f32 1.0, %v1033_v58  ;;  %v1035_v60 = vpop.eup %1034 }
 0xc21   :  { %1036 = vrcp.f32 %v491_v59 }
 0xc2e   :  { %v1037_v61 = vpop.eup %1036 }
 0xc2f   :  { %v495_v62 = vsel %vm133_vm3, %v1037_v61, %v1035_v60 }
 0xc30   :  { %498 = vrot.lane.b32.xlu0 %v495_v62, %s1108_s4  ;;  %v496_v4 = vmul.f32 %v495_v62, %v432_v45 }
 0xca2   :  { %v499_v63 = vpop.permute.xlu0 %498 }
 0xca3   :  { %v501_v0 = vmul.f32 %v499_v63, %v495_v62 }
 0xca5   :  { %503 = vrot.lane.b32.xlu1 %v501_v0, %s1108_s4 }
 0xd17   :  { %v504_v5 = vpop.permute.xlu1 %503 }
 0xd18   :  { %v506_v6 = vadd.f32 %v504_v5, %v496_v4 }
 0xd1a   :  { %1038 = vtanh.f32 %v506_v6 }
 0xd27   :  { %v1039_v7 = vpop.eup %1038 }
 0xd28   :  { %509 = vrot.lane.b32.xlu0 %v1039_v7, %s1108_s4 }
 0xd9a   :  { %v510_v8 = vpop.permute.xlu0 %509 }
 0xd9b   :  { %v512_v9 = vmul.f32 %v510_v8, %v495_v62 }
 0xd9d   :  { %v514_v10 = vpack.c.bf16 %v512_v9, %v512_v9 }
 0xd9f   :  { %516 = vrot.lane.b32.xlu1 %v514_v10, %s1109_s17 }
 0xe11   :  { %v517_v11 = vpop.permute.xlu1 %516 }
 0xe12   :  { %960 = vmatmul.mubr.msk.bf16.vlgmr.msra.gmra.mxu0 %vm147_vm4, %v517_v11  ;;  %v738_v11 = vld [vmem:[%s1344_s5 + $0x18] sm:$0xff] }
 0xe13   :  { %972 = vmatpush3.bf16.msra.mxu0 %v1162_v2  ;;  %975 = vmatprep.mubr.msk.bf16.mxu0 %vm1106_vm0, %v1105_v1 }
 0xe14   :  { %973 = vmatprep.subr.bf16.mxu0 %v1105_v1 }
 0xe17   :  { %974 = vmatpush3.bf16.msra.mxu0 %v1170_v3 }
 0xed2   :  { %v555_v13 = vpop.f32.mrf.mxu0 }
 0xed3   :  { %v561_v14 = vadd.f32 %v555_v13, %v513_v12  ;;  %v737_v12 = vld [vmem:[%s1344_s5 + $0x10] sm:$0xff]  ;;  %v735_v13 = vld [vmem:[%s1344_s5] sm:$0xff]  ;;  %s1110_s5 = smov [#allocation6]  }
 0xed4   :  { %v961_v15 = vpop.f32.mrf.mxu0  ;;  %s834_s27 = sshll.u32 %s1110_s5, 4  ;;  %s835_s27 = int_to_ptr.vmem [resolvable:$true] %s834_s27 }
 0xed5   :  { %v872_v16 = vmul.f32 -1.442695, %v561_v14  ;;  %s1084_s28 = scalar_lea.vmem %s835_s27, 32  ;;  %p1085_p6 = scmp.lt.s32.totalorder %s835_s27, %s835_s27 }
 0xed6   :  { %v558_v17 = vpop.f32.mrf.mxu0 }
 0xed7   :  { %1040 = vpow2.f32 %v872_v16 }
 0xed8   :  { %v962_v18 = vpop.f32.mrf.mxu0  ;;  %1042 = vtanh.f32 %v561_v14 }
 0xed9   :  { %v739_v18 = vld [vmem:[%s1345_s6] sm:$0x1]  ;;  %s1080_s6 = scalar_lea.vmem %s835_s27, 16 }
 0xeda   :  { %p1081_p5 = scmp.ne.s32.totalorder %s835_s27, %s1080_s6  ;;  %p1086_p7 = scmp.lt.s32.totalorder %s1084_s28, %s1080_s6 }
 0xedc   :  { %p1087_p8 = por %p1086_p7, %p1085_p6 }
 0xede   :  { %p1088_p9 = pnand %p1087_p8, %p1081_p5 }
 0xee4   :  { %v1041_v19 = vpop.eup %1040 }
 0xee5   :  { %v565_v20 = vadd.f32 1.0, %v1041_v19  ;;  %v1043_v2 = vpop.eup %1042 }
 0xee7   :  { %1044 = vrcp.f32 %v565_v20 }
 0xef4   :  { %v1045_v21 = vpop.eup %1044 }
 0xef5   :  { %v569_v22 = vsel %vm133_vm3, %v1045_v21, %v1043_v2 }
 0xef6   :  { %572 = vrot.lane.b32.xlu0 %v569_v22, %s1108_s4  ;;  %v570_v24 = vmul.f32 %v569_v22, %v506_v6 }
 0xf68   :  { %v573_v3 = vpop.permute.xlu0 %572 }
 0xf69   :  { %v575_v23 = vmul.f32 %v573_v3, %v569_v22 }
 0xf6b   :  { %577 = vrot.lane.b32.xlu1 %v575_v23, %s1108_s4 }
 0xfdd   :  { %v578_v25 = vpop.permute.xlu1 %577 }
 0xfde   :  { %v580_v26 = vadd.f32 %v578_v25, %v570_v24 }
 0xfe0   :  { %1046 = vtanh.f32 %v580_v26 }
 0xfed   :  { %v1047_v27 = vpop.eup %1046 }
 0xfee   :  { %583 = vrot.lane.b32.xlu0 %v1047_v27, %s1108_s4 }
0x1060   :  { %v584_v28 = vpop.permute.xlu0 %583 }
0x1061   :  { %v586_v29 = vmul.f32 %v584_v28, %v569_v22 }
0x1063   :  { %v588_v30 = vpack.c.bf16 %v586_v29, %v586_v29 }
0x1065   :  { %590 = vrot.lane.b32.xlu1 %v588_v30, %s1109_s17 }
0x10d7   :  { %v591_v32 = vpop.permute.xlu1 %590 }
0x10d8   :  { %968 = vmatmul.mubr.msk.bf16.vlgmr.msra.gmra.mxu1 %vm147_vm4, %v591_v32 }
0x10d9   :  { %987 = vmatprep.mubr.msk.f32.mxu1 %vm1106_vm0, %v1105_v1  ;;  %980 = vmatpush3.msra.mxu1 %v738_v11 }
0x10da   :  { %981 = vmatprep.subr.mxu1 %v1105_v1 }
0x10db   :  { %982 = vmatpush3.msra.mxu1 %v737_v12 }
0x10dc   :  { %983 = vmatprep.subr.mxu1 %v1105_v1 }
0x10dd   :  { %984 = vmatpush3.msra.mxu1 %v736_v31 }
0x10de   :  { %985 = vmatprep.subr.mxu1 %v1105_v1 }
0x10df   :  { %986 = vmatpush3.msra.mxu1 %v735_v13 }
0x1198   :  { %v629_v34 = vpop.f32.mrf.mxu1 }
0x1199   :  { %v635_v35 = vadd.f32 %v629_v34, %v587_v33 }
0x119a   :  { %v969_v36 = vpop.f32.mrf.mxu1 }
0x119b   :  { %v874_v37 = vmul.f32 -1.442695, %v635_v35 }
0x119c   :  { %v632_v38 = vpop.f32.mrf.mxu1 }
0x119d   :  { %1048 = vpow2.f32 %v874_v37 }
0x119e   :  { %v970_v39 = vpop.f32.mrf.mxu1  ;;  %1050 = vtanh.f32 %v635_v35 }
0x11aa   :  { %v1049_v40 = vpop.eup %1048 }
0x11ab   :  { %v639_v41 = vadd.f32 1.0, %v1049_v40  ;;  %v1051_v42 = vpop.eup %1050 }
0x11ad   :  { %1052 = vrcp.f32 %v639_v41 }
0x11ba   :  { %v1053_v43 = vpop.eup %1052 }
0x11bb   :  { %v643_v44 = vsel %vm133_vm3, %v1053_v43, %v1051_v42 }
0x11bc   :  { %646 = vrot.lane.b32.xlu0 %v643_v44, %s1108_s4  ;;  %v644_v47 = vmul.f32 %v643_v44, %v580_v26 }
0x122e   :  { %v647_v45 = vpop.permute.xlu0 %646 }
0x122f   :  { %v649_v46 = vmul.f32 %v647_v45, %v643_v44 }
0x1231   :  { %651 = vrot.lane.b32.xlu1 %v649_v46, %s1108_s4 }
0x12a3   :  { %v652_v48 = vpop.permute.xlu1 %651 }
0x12a4   :  { %v654_v49 = vadd.f32 %v652_v48, %v644_v47 }
0x12a6   :  { %1054 = vtanh.f32 %v654_v49 }
0x12b3   :  { %v1055_v50 = vpop.eup %1054 }
0x12b4   :  { %657 = vrot.lane.b32.xlu0 %v1055_v50, %s1108_s4 }
0x1326   :  { %v658_v51 = vpop.permute.xlu0 %657 }
0x1327   :  { %v660_v52 = vmul.f32 %v658_v51, %v643_v44 }
0x1329   :  { %v662_v53 = vpack.c.bf16 %v660_v52, %v660_v52 }
0x132b   :  { %664 = vrot.lane.b32.xlu1 %v662_v53, %s1109_s17 }
0x139d   :  { %v665_v54 = vpop.permute.xlu1 %664 }
0x139e   :  { %976 = vmatmul.mubr.msk.bf16.vlgmr.msra.gmra.mxu0 %vm147_vm4, %v665_v54 }
0x145e   :  { %v703_v56 = vpop.f32.mrf.mxu0 }
0x145f   :  { %v709_v57 = vadd.f32 %v703_v56, %v661_v55 }
0x1460   :  { %v977_v58 = vpop.f32.mrf.mxu0 }
0x1461   :  { %v876_v59 = vmul.f32 -1.442695, %v709_v57 }
0x1462   :  { %v706_v60 = vpop.f32.mrf.mxu0 }
0x1463   :  { %1056 = vpow2.f32 %v876_v59 }
0x1464   :  { %v978_v61 = vpop.f32.mrf.mxu0  ;;  %1058 = vtanh.f32 %v709_v57 }
0x1470   :  { %v1057_v62 = vpop.eup %1056 }
0x1471   :  { %v713_v63 = vadd.f32 1.0, %v1057_v62  ;;  %v1059_v0 = vpop.eup %1058 }
0x1473   :  { %1060 = vrcp.f32 %v713_v63 }
0x1480   :  { %v1061_v4 = vpop.eup %1060 }
0x1481   :  { %v717_v5 = vsel %vm133_vm3, %v1061_v4, %v1059_v0 }
0x1482   :  { %720 = vrot.lane.b32.xlu0 %v717_v5, %s1108_s4  ;;  %v718_v8 = vmul.f32 %v717_v5, %v654_v49 }
0x14f4   :  { %v721_v6 = vpop.permute.xlu0 %720 }
0x14f5   :  { %v723_v7 = vmul.f32 %v721_v6, %v717_v5 }
0x14f7   :  { %725 = vrot.lane.b32.xlu1 %v723_v7, %s1108_s4 }
0x1569   :  { %v726_v9 = vpop.permute.xlu1 %725 }
0x156a   :  { %v728_v10 = vadd.f32 %v726_v9, %v718_v8 }
0x156c   :  { %1062 = vtanh.f32 %v728_v10 }
0x1579   :  { %v1063_v14 = vpop.eup %1062 }
0x157a   :  { %731 = vrot.lane.b32.xlu0 %v1063_v14, %s1108_s4 }
0x15ec   :  { %v732_v15 = vpop.permute.xlu0 %731 }
0x15ed   :  { %v734_v16 = vmul.f32 %v732_v15, %v717_v5 }
0x15ef   :  { %741 = vrot.lane.b32.xlu1 %v734_v16, %s1109_s17 }
0x1661   :  { %v742_v17 = vpop.permute.xlu1 %741 }
0x1662   :  { %988 = vmatmul.mubr.msk.f32.vlgmr.msra.gmra.mxu1 %vm147_vm4, %v742_v17 }
0x1722   :  { %v811_v19 = vpop.f32.mrf.mxu1 }
0x1723   :  { %v812_v20 = vadd.f32 %v811_v19, %v739_v18 }
0x1724   :  { %v989_v2 = vpop.f32.mrf.mxu1 }
0x1725   :  { %v816_v1 = vsel %vm815_vm5, %v812_v20, -inf }
0x1726   :  { %817 = vmax.xlane.f32.xlu0 %v816_v1 }
0x17af   :  { %v818_v21 = vpop.xlane.xlu0 %817 }
0x17b0   :  { %v819_v22 = vsub.f32 %v812_v20, %v818_v21 }
0x17b2   :  { %v820_v3 = vmul.f32 1.442695, %v819_v22 }
0x17b4   :  { %1064 = vpow2.f32 %v820_v3 }
0x17c1   :  { %v1065_v23 = vpop.eup %1064 }
0x17c2   :  { %v822_v24 = vsel %vm815_vm5, %v1065_v23, 0.0 }
0x17c3   :  { %823 = vadd.xlane.f32.xlu1 %v822_v24 }
0x184c   :  { %v824_v25 = vpop.xlane.xlu1 %823 }
0x184d   :  { %1066 = vrcp.f32 %v824_v25 }
0x185a   :  { %v1067_v26 = vpop.eup %1066 }
0x185b   :  { %v826_v27 = vmul.f32 %v1067_v26, %v1065_v23 }
0x185d   :  { %827 = vst.msk [vmem:[#allocation6] sm:$0x1] %vm815_vm5, %v826_v27 }
0x185e   :  { %1091 = shalt.err (!%p1088_p9)
}
0x185f   :  { %837 = dma.vmem_to_hbm [thread:$0]  %s835_s27, 16, %s1346_s7, [#allocation7]  }
0x1860   :  { %1102 = dma.done.wait [#allocation7], 16  }
0x1861   :  { %1103 = vsyncadd [#allocation7], 4294967280 }
0x1862   :  { %841 = vsyncpa [#allocation7], 1 }

</bundles_post_ra>
